<compile_context>
chip_gen: v7x
topology: tpu7x:2x2x1
jax: 0.10.0
libtpu: 0.0.40
codegen_flags: <defaults>
</compile_context>

<pallas_src>
import functools

import jax
import jax.numpy as jnp
from jax import lax
from jax.experimental import pallas as pl
from jax.experimental.pallas import tpu as pltpu

EPSILON = 1e-07
NUM_CLASSES = 2          # F.one_hot(y_true, 2) in the reference module
LANES = 128              # TPU lane width
SUBLANES = 8             # f32 sublane tile
CHUNK = 32               # rows per inner accumulation chunk (4 f32 vregs)
ACC_ROWS = 2 * SUBLANES  # accumulator rows: [sum(p); sum(y*p)]


def _cdiv(a, b):
    return -(-a // b)


def _round_up(a, b):
    return _cdiv(a, b) * b


def _tree_fold8(v):
    """(R, 128) -> (8, 128) via a pairwise tree of vreg-wise adds (R % 8 == 0)."""
    parts = [v[i * SUBLANES:(i + 1) * SUBLANES, :]
             for i in range(v.shape[0] // SUBLANES)]
    while len(parts) > 1:
        nxt = [parts[i] + parts[i + 1] for i in range(0, len(parts) - 1, 2)]
        if len(parts) % 2:
            nxt.append(parts[-1])
        parts = nxt
    return parts[0]


def _f1_partial_sums_kernel(x_ref, oh_ref, acc_ref, *, tile_rows, slab_rows,
                            inner_tiles, approx_recip):
    """Accumulate lane-dense partial sums for the F1 loss.

    x_ref  : (tile_rows, 128) logits (f32 or bf16), sample-interleaved on the
             lanes (lane 2i = class-0 logit, lane 2i+1 = class-1 logit).
    oh_ref : (tile_rows, 128) int8 one-hot labels, same interleaved layout.
    acc_ref: (16, 128) f32 output block, revisited along the reduction axis:
               rows 0:8  -> sum of softmax probability p
               rows 8:16 -> sum of y * p                (true positives)
             Even lanes accumulate class 0, odd lanes class 1.
    """
    split = pl.program_id(0)      # "parallel"  axis (v7x megacore split)
    step = pl.program_id(1)       # "arbitrary" axis (batch-tile reduction)

    @pl.when(step == 0)
    def _init():
        acc_ref[...] = jnp.zeros_like(acc_ref)

    tile_idx = split * inner_tiles + step
    tile_base_row = tile_idx * tile_rows            # logical first slab row

    # Hoisted per-step constants (loop-invariant vregs).
    lane = lax.broadcasted_iota(jnp.int32, (CHUNK, LANES), 1)
    is_even = (lane & 1) == 0
    row_in_chunk = lax.broadcasted_iota(jnp.int32, (CHUNK, LANES), 0)

    n_chunks = tile_rows // CHUNK

    def chunk_sums(c, masked):
        r0 = pl.multiple_of(c * CHUNK, CHUNK)
        x = x_ref[pl.ds(r0, CHUNK), :].astype(jnp.float32)

        # Pair partner of every lane (its even/odd mate): two XLU rotations
        # within each 128-lane row (pairs never straddle a row).
        partner = jnp.where(
            is_even,
            pltpu.roll(x, LANES - 1, axis=1),   # lane j -> x[j + 1]
            pltpu.roll(x, 1, axis=1),           # lane j -> x[j - 1]
        )
        # Two-class softmax == sigmoid of the pairwise margin; stable split
        # (exp always sees a non-positive argument).
        margin = x - partner
        e = jnp.exp(-jnp.abs(margin))
        r = pl.reciprocal(1.0 + e, approx=approx_recip)     # EUP slot
        p = jnp.where(margin >= 0, r, e * r)                # per-class prob

        if masked:
            # Only the final (partial) tile pays for this: rows past the end
            # of the slab contain unspecified data and must contribute 0.
            # jnp.where does not propagate NaN/Inf from the dropped branch.
            valid = (tile_base_row + r0 + row_in_chunk) < slab_rows
            p = jnp.where(valid, p, 0.0)

        oh = oh_ref[pl.ds(r0, CHUNK), :].astype(jnp.float32)
        return _tree_fold8(p), _tree_fold8(oh * p)

    def accumulate(masked):
        def body(c, carry):
            acc_p, acc_yp = carry
            dp, dyp = chunk_sums(c, masked)
            return acc_p + dp, acc_yp + dyp

        zero = jnp.zeros((SUBLANES, LANES), jnp.float32)
        acc_p, acc_yp = lax.fori_loop(0, n_chunks, body, (zero, zero))
        acc_ref[0:SUBLANES, :] += acc_p
        acc_ref[SUBLANES:2 * SUBLANES, :] += acc_yp

    tile_is_full = (tile_base_row + tile_rows) <= slab_rows

    @pl.when(tile_is_full)
    def _fast():
        accumulate(masked=False)

    @pl.when(jnp.logical_not(tile_is_full))
    def _tail():
        accumulate(masked=True)


def f1_loss(y_pred, y_true, *, epsilon=EPSILON, approx_reciprocal=False,
            max_tile_rows=2048, core_splits=1):
    """1 - mean(F1 over the 2 classes); matches F1_Loss.forward.

    y_pred: (N, 2) float logits (f32 or bf16), y_true: (N,) int labels {0, 1}.
    core_splits: 1 for v5e/v6e (single TensorCore); 2 on v7x.
    """
    assert y_pred.ndim == 2 and y_pred.shape[1] == NUM_CLASSES
    assert y_true.ndim == 1 and y_true.shape[0] == y_pred.shape[0]
    n = y_pred.shape[0]
    assert n >= 1

    if y_pred.dtype not in (jnp.float32, jnp.bfloat16):
        y_pred = y_pred.astype(jnp.float32)
    y_true_i = y_true.astype(jnp.int32)

    # ---- lane-dense, sample-interleaved input slabs --------------------------
    valid_elems = NUM_CLASSES * n
    slab_rows = _cdiv(valid_elems, LANES)
    slab_elems = slab_rows * LANES
    pad_elems = slab_elems - valid_elems            # < 128 and always even

    x_flat = y_pred.reshape(-1)                     # free (contiguous) reshape
    if pad_elems:
        # TODO(synk): when 2N % 128 != 0 this minimal pad still materializes a
        # copy of the logits; the zero-padded pairs contribute exactly 0.5 per
        # class to sum(p) and are subtracted in the epilogue below.
        x_flat = jnp.pad(x_flat, (0, pad_elems))
    x_slab = x_flat.reshape(slab_rows, LANES)

    # int8 one-hot (4x less HBM than f32), same interleaved layout as x_slab.
    oh_flat = (y_true_i[:, None] ==
               jnp.arange(NUM_CLASSES, dtype=jnp.int32)[None, :]
               ).astype(jnp.int8).reshape(-1)
    if pad_elems:
        oh_flat = jnp.pad(oh_flat, (0, pad_elems))
    oh_slab = oh_flat.reshape(slab_rows, LANES)

    # ---- grid ----------------------------------------------------------------
    max_tile_rows = _round_up(max(max_tile_rows, CHUNK), CHUNK)
    tile_rows = min(max_tile_rows, _round_up(slab_rows, CHUNK))
    num_tiles = _cdiv(slab_rows, tile_rows)
    num_splits = max(1, min(core_splits, num_tiles))
    inner = _cdiv(num_tiles, num_splits)

    def block_index(s, t):
        # With core_splits > 1 and an odd tile count, the last (s, t) pairs
        # map past the end of the slab; the kernel masks their contribution
        # to zero — the clamp just keeps the DMA in bounds.
        return (jnp.minimum(s * inner + t, num_tiles - 1), 0)

    kernel = functools.partial(
        _f1_partial_sums_kernel,
        tile_rows=tile_rows, slab_rows=slab_rows, inner_tiles=inner,
        approx_recip=approx_reciprocal)

    partials = pl.pallas_call(
        kernel,
        out_shape=jax.ShapeDtypeStruct((num_splits, ACC_ROWS, LANES), jnp.float32),
        grid=(num_splits, inner),
        in_specs=[
            pl.BlockSpec((tile_rows, LANES), block_index),
            pl.BlockSpec((tile_rows, LANES), block_index),
        ],
        out_specs=pl.BlockSpec((None, ACC_ROWS, LANES), lambda s, t: (s, 0, 0)),
        compiler_params=pltpu.CompilerParams(
            dimension_semantics=("parallel", "arbitrary")),
    )(x_slab, oh_slab)

    # ---- tiny epilogue: combine splits, parity-reduce, scalar F1 -------------
    acc = jnp.sum(partials, axis=0)                          # (16, 128)
    sum_p_lanes = acc[0:SUBLANES]
    sum_yp_lanes = acc[SUBLANES:2 * SUBLANES]

    is_even_lane = (jnp.arange(LANES) % 2) == 0              # even lane -> class 0

    def per_class(a):                                        # -> (2,): [c0, c1]
        total = jnp.sum(a)
        c0 = jnp.sum(jnp.where(is_even_lane[None, :], a, 0.0))
        return jnp.stack([c0, total - c0])

    sum_p = per_class(sum_p_lanes)
    if pad_elems:
        # Each zero-padded logit pair contributes exactly 0.5 to each class.
        sum_p = sum_p - 0.5 * (pad_elems // 2)
    tp = per_class(sum_yp_lanes)

    # Per-class label counts need no kernel: sum_y = [N - sum(y), sum(y)].
    count1 = jnp.sum(y_true_i).astype(jnp.float32)
    sum_y = jnp.stack([jnp.asarray(float(n), jnp.float32) - count1, count1])

    fp = sum_p - tp
    fn = sum_y - tp
    # tn is computed in the reference module but never used in the loss.
    precision = tp / (tp + fp + epsilon)
    recall = tp / (tp + fn + epsilon)
    f1 = 2.0 * precision * recall / (precision + recall + epsilon)
    f1 = jnp.clip(f1, epsilon, 1.0 - epsilon)
    return 1.0 - jnp.mean(f1)


def _f1_loss_ref(y_pred, y_true, epsilon=EPSILON):
    """Pure-JAX reference mirroring the PyTorch forward."""
    y_true_oh = jax.nn.one_hot(y_true, NUM_CLASSES, dtype=jnp.float32)
    p = jax.nn.softmax(y_pred.astype(jnp.float32), axis=1)
    tp = jnp.sum(y_true_oh * p, axis=0)
    fp = jnp.sum((1.0 - y_true_oh) * p, axis=0)
    fn = jnp.sum(y_true_oh * (1.0 - p), axis=0)
    precision = tp / (tp + fp + epsilon)
    recall = tp / (tp + fn + epsilon)
    f1 = 2.0 * precision * recall / (precision + recall + epsilon)
    f1 = jnp.clip(f1, epsilon, 1.0 - epsilon)
    return 1.0 - jnp.mean(f1)


if __name__ == "__main__":
    key = jax.random.PRNGKey(0)
    k1, k2, k3, k4, k5, k6 = jax.random.split(key, 6)

    # Case 1: small misaligned batch (2N % 128 != 0) -> single partial tile,
    # masked tail path + epilogue pad correction.
    n1 = 333
    y_pred1 = jax.random.normal(k1, (n1, NUM_CLASSES), dtype=jnp.float32) * 3.0
    y_true1 = jax.random.randint(k2, (n1,), 0, NUM_CLASSES, dtype=jnp.int32)
    loss1 = f1_loss(y_pred1, y_true1)
    jax.block_until_ready(loss1)
    ref1 = _f1_loss_ref(y_pred1, y_true1)
    assert abs(float(loss1) - float(ref1)) < 1e-4, (loss1, ref1)

    # Case 2: lane-aligned batch (2N % 128 == 0 -> zero-copy reshape, no pad),
    # multi-tile reduction with a deliberately small tile, 2-way core split
    # (v7x-style) and an odd tile count (exercises clamped duplicate tiles
    # plus a partial last tile).
    n2 = 4160
    y_pred2 = jax.random.normal(k3, (n2, NUM_CLASSES), dtype=jnp.float32) * 2.0
    y_true2 = jax.random.randint(k4, (n2,), 0, NUM_CLASSES, dtype=jnp.int32)
    loss2 = f1_loss(y_pred2, y_true2, max_tile_rows=32, core_splits=2)
    jax.block_until_ready(loss2)
    ref2 = _f1_loss_ref(y_pred2, y_true2)
    assert abs(float(loss2) - float(ref2)) < 1e-4, (loss2, ref2)

    # Case 3: bf16 logits fed straight through (upcast per chunk in-kernel),
    # approximate EUP reciprocal path.
    n3 = 1024
    y_pred3 = (jax.random.normal(k5, (n3, NUM_CLASSES), dtype=jnp.float32) * 2.0
               ).astype(jnp.bfloat16)
    y_true3 = jax.random.randint(k6, (n3,), 0, NUM_CLASSES, dtype=jnp.int32)
    loss3 = f1_loss(y_pred3, y_true3, approx_reciprocal=True)
    jax.block_until_ready(loss3)
    ref3 = _f1_loss_ref(y_pred3, y_true3)
    assert abs(float(loss3) - float(ref3)) < 3e-2, (loss3, ref3)

    print("KERNEL_OK")
</pallas_src>

<mosaic_0001>
module attributes {stable_mosaic.version = 11 : i64} {
  func.func @_f1_partial_sums_kernel(%arg0: i32, %arg1: i32, %arg2: memref<32x128xf32, #tpu.memory_space<vmem>>, %arg3: memref<32x128xi8, #tpu.memory_space<vmem>>, %arg4: memref<1x16x128xf32, #tpu.memory_space<vmem>>) attributes {dimension_semantics = [#tpu.dimension_semantics<parallel>, #tpu.dimension_semantics<arbitrary>], iteration_bounds = array<i64: 1, 1>, scalar_prefetch = 0 : i64, scratch_operands = 0 : i64, tpu.core_type = #tpu.core_type<tc>, window_params = [{transform_indices = @transform_0, window_bounds = array<i64: 32, 128>}, {transform_indices = @transform_1, window_bounds = array<i64: 32, 128>}, {transform_indices = @transform_2, window_bounds = array<i64: 1, 16, 128>}]} {
    %c0_i32 = arith.constant 0 : i32
    %0 = arith.cmpi eq, %arg1, %c0_i32 : i32
    %1 = arith.extui %0 : i1 to i32
    %c0_i32_0 = arith.constant 0 : i32
    %2 = arith.cmpi ne, %1, %c0_i32_0 : i32
    scf.if %2 {
      %cst = arith.constant 0.000000e+00 : f32
      %19 = vector.broadcast %cst : f32 to vector<16x128xf32>
      %c0 = arith.constant 0 : index
      %c0_6 = arith.constant 0 : index
      %c0_7 = arith.constant 0 : index
      %20 = vector.load %arg4[%c0, %c0_6, %c0_7] : memref<1x16x128xf32, #tpu.memory_space<vmem>>, vector<1x16x128xf32>
      %21 = vector.shape_cast %20 : vector<1x16x128xf32> to vector<16x128xf32>
      %22 = vector.shape_cast %19 : vector<16x128xf32> to vector<1x16x128xf32>
      tpu.vector_store %arg4[%c0, %c0_6, %c0_7], %22 {strides = array<i32>} : memref<1x16x128xf32, #tpu.memory_space<vmem>>, vector<1x16x128xf32>,
    } else {
    }
    %c1_i32 = arith.constant 1 : i32
    %3 = arith.muli %arg0, %c1_i32 : i32
    %4 = arith.addi %3, %arg1 : i32
    %c32_i32 = arith.constant 32 : i32
    %5 = arith.muli %4, %c32_i32 : i32
    %6 = tpu.iota {dimensions = array<i32: 1>} : vector<32x128xi32>
    %c1_i32_1 = arith.constant 1 : i32
    %7 = vector.broadcast %c1_i32_1 : i32 to vector<32x128xi32>
    %8 = arith.andi %6, %7 : vector<32x128xi32>
    %c0_i32_2 = arith.constant 0 : i32
    %9 = vector.broadcast %c0_i32_2 : i32 to vector<32x128xi32>
    %10 = arith.cmpi eq, %8, %9 : vector<32x128xi32>
    %11 = tpu.iota {dimensions = array<i32: 0>} : vector<32x128xi32>
    %c32_i32_3 = arith.constant 32 : i32
    %12 = arith.addi %5, %c32_i32_3 : i32
    %c6_i32 = arith.constant 6 : i32
    %13 = arith.cmpi sle, %12, %c6_i32 : i32
    %14 = arith.extui %13 : i1 to i32
    %c0_i32_4 = arith.constant 0 : i32
    %15 = arith.cmpi ne, %14, %c0_i32_4 : i32
    scf.if %15 {
      %cst = arith.constant 0.000000e+00 : f32
      %19 = vector.broadcast %cst : f32 to vector<8x128xf32>
      %c0_i32_6 = arith.constant 0 : i32
      %c32_i32_7 = arith.constant 32 : i32
      %20 = arith.muli %c0_i32_6, %c32_i32_7 : i32
      %21 = tpu.assume_multiple %20, 32 : i32
      %22 = arith.index_cast %21 : i32 to index
      %c0 = arith.constant 0 : index
      %23 = vector.load %arg2[%22, %c0] : memref<32x128xf32, #tpu.memory_space<vmem>>, vector<32x128xf32>
      %c127_i32 = arith.constant 127 : i32
      %24 = tpu.dynamic_rotate %23 by %c127_i32 dim 1 : vector<32x128xf32>, i32 -> vector<32x128xf32>
      %c1_i32_8 = arith.constant 1 : i32
      %25 = tpu.dynamic_rotate %23 by %c1_i32_8 dim 1 : vector<32x128xf32>, i32 -> vector<32x128xf32>
      %26 = arith.select %10, %24, %25 : vector<32x128xi1>, vector<32x128xf32>
      %27 = arith.subf %23, %26 : vector<32x128xf32>
      %28 = math.absf %27 : vector<32x128xf32>
      %cst_9 = arith.constant 0.000000e+00 : f32
      %29 = vector.broadcast %cst_9 : f32 to vector<32x128xf32>
      %30 = arith.subf %29, %28 : vector<32x128xf32>
      %31 = math.exp %30 : vector<32x128xf32>
      %cst_10 = arith.constant 1.000000e+00 : f32
      %32 = vector.broadcast %cst_10 : f32 to vector<32x128xf32>
      %33 = arith.addf %32, %31 : vector<32x128xf32>
      %34 = tpu.reciprocal %33 : vector<32x128xf32> -> vector<32x128xf32>
      %cst_11 = arith.constant 0.000000e+00 : f32
      %35 = vector.broadcast %cst_11 : f32 to vector<32x128xf32>
      %36 = arith.cmpf oge, %27, %35 : vector<32x128xf32>
      %37 = arith.mulf %31, %34 : vector<32x128xf32>
      %38 = arith.select %36, %34, %37 : vector<32x128xi1>, vector<32x128xf32>
      %39 = arith.index_cast %21 : i32 to index
      %c0_12 = arith.constant 0 : index
      %40 = vector.load %arg3[%39, %c0_12] : memref<32x128xi8, #tpu.memory_space<vmem>>, vector<32x128xi8>
      %41 = arith.sitofp %40 : vector<32x128xi8> to vector<32x128xf32>
      %42 = vector.extract_strided_slice %38 {offsets = [0, 0], sizes = [8, 128], strides = [1, 1]} : vector<32x128xf32> to vector<8x128xf32>
      %43 = vector.extract_strided_slice %38 {offsets = [8, 0], sizes = [8, 128], strides = [1, 1]} : vector<32x128xf32> to vector<8x128xf32>
      %44 = vector.extract_strided_slice %38 {offsets = [16, 0], sizes = [8, 128], strides = [1, 1]} : vector<32x128xf32> to vector<8x128xf32>
      %45 = vector.extract_strided_slice %38 {offsets = [24, 0], sizes = [8, 128], strides = [1, 1]} : vector<32x128xf32> to vector<8x128xf32>
      %46 = arith.addf %42, %43 : vector<8x128xf32>
      %47 = arith.addf %44, %45 : vector<8x128xf32>
      %48 = arith.addf %46, %47 : vector<8x128xf32>
      %49 = arith.mulf %41, %38 : vector<32x128xf32>
      %50 = vector.extract_strided_slice %49 {offsets = [0, 0], sizes = [8, 128], strides = [1, 1]} : vector<32x128xf32> to vector<8x128xf32>
      %51 = vector.extract_strided_slice %49 {offsets = [8, 0], sizes = [8, 128], strides = [1, 1]} : vector<32x128xf32> to vector<8x128xf32>
      %52 = vector.extract_strided_slice %49 {offsets = [16, 0], sizes = [8, 128], strides = [1, 1]} : vector<32x128xf32> to vector<8x128xf32>
      %53 = vector.extract_strided_slice %49 {offsets = [24, 0], sizes = [8, 128], strides = [1, 1]} : vector<32x128xf32> to vector<8x128xf32>
      %54 = arith.addf %50, %51 : vector<8x128xf32>
      %55 = arith.addf %52, %53 : vector<8x128xf32>
      %56 = arith.addf %54, %55 : vector<8x128xf32>
      %57 = arith.addf %19, %48 : vector<8x128xf32>
      %58 = arith.addf %19, %56 : vector<8x128xf32>
      %c1_i32_13 = arith.constant 1 : i32
      %c0_14 = arith.constant 0 : index
      %c0_15 = arith.constant 0 : index
      %c0_16 = arith.constant 0 : index
      %59 = vector.load %arg4[%c0_14, %c0_15, %c0_16] : memref<1x16x128xf32, #tpu.memory_space<vmem>>, vector<1x8x128xf32>
      %60 = vector.shape_cast %59 : vector<1x8x128xf32> to vector<8x128xf32>
      %61 = arith.addf %60, %57 : vector<8x128xf32>
      %c0_17 = arith.constant 0 : index
      %c0_18 = arith.constant 0 : index
      %c0_19 = arith.constant 0 : index
      %62 = vector.load %arg4[%c0_17, %c0_18, %c0_19] : memref<1x16x128xf32, #tpu.memory_space<vmem>>, vector<1x8x128xf32>
      %63 = vector.shape_cast %62 : vector<1x8x128xf32> to vector<8x128xf32>
      %64 = vector.shape_cast %61 : vector<8x128xf32> to vector<1x8x128xf32>
      tpu.vector_store %arg4[%c0_17, %c0_18, %c0_19], %64 {strides = array<i32>} : memref<1x16x128xf32, #tpu.memory_space<vmem>>, vector<1x8x128xf32>,
      %c0_20 = arith.constant 0 : index
      %c8 = arith.constant 8 : index
      %c0_21 = arith.constant 0 : index
      %65 = vector.load %arg4[%c0_20, %c8, %c0_21] : memref<1x16x128xf32, #tpu.memory_space<vmem>>, vector<1x8x128xf32>
      %66 = vector.shape_cast %65 : vector<1x8x128xf32> to vector<8x128xf32>
      %67 = arith.addf %66, %58 : vector<8x128xf32>
      %c0_22 = arith.constant 0 : index
      %c8_23 = arith.constant 8 : index
      %c0_24 = arith.constant 0 : index
      %68 = vector.load %arg4[%c0_22, %c8_23, %c0_24] : memref<1x16x128xf32, #tpu.memory_space<vmem>>, vector<1x8x128xf32>
      %69 = vector.shape_cast %68 : vector<1x8x128xf32> to vector<8x128xf32>
      %70 = vector.shape_cast %67 : vector<8x128xf32> to vector<1x8x128xf32>
      tpu.vector_store %arg4[%c0_22, %c8_23, %c0_24], %70 {strides = array<i32>} : memref<1x16x128xf32, #tpu.memory_space<vmem>>, vector<1x8x128xf32>,
    } else {
    }
    %true = arith.constant true
    %16 = arith.xori %13, %true : i1
    %17 = arith.extui %16 : i1 to i32
    %c0_i32_5 = arith.constant 0 : i32
    %18 = arith.cmpi ne, %17, %c0_i32_5 : i32
    scf.if %18 {
      %cst = arith.constant 0.000000e+00 : f32
      %19 = vector.broadcast %cst : f32 to vector<8x128xf32>
      %c0_i32_6 = arith.constant 0 : i32
      %c32_i32_7 = arith.constant 32 : i32
      %20 = arith.muli %c0_i32_6, %c32_i32_7 : i32
      %21 = tpu.assume_multiple %20, 32 : i32
      %22 = arith.index_cast %21 : i32 to index
      %c0 = arith.constant 0 : index
      %23 = vector.load %arg2[%22, %c0] : memref<32x128xf32, #tpu.memory_space<vmem>>, vector<32x128xf32>
      %c127_i32 = arith.constant 127 : i32
      %24 = tpu.dynamic_rotate %23 by %c127_i32 dim 1 : vector<32x128xf32>, i32 -> vector<32x128xf32>
      %c1_i32_8 = arith.constant 1 : i32
      %25 = tpu.dynamic_rotate %23 by %c1_i32_8 dim 1 : vector<32x128xf32>, i32 -> vector<32x128xf32>
      %26 = arith.select %10, %24, %25 : vector<32x128xi1>, vector<32x128xf32>
      %27 = arith.subf %23, %26 : vector<32x128xf32>
      %28 = math.absf %27 : vector<32x128xf32>
      %cst_9 = arith.constant 0.000000e+00 : f32
      %29 = vector.broadcast %cst_9 : f32 to vector<32x128xf32>
      %30 = arith.subf %29, %28 : vector<32x128xf32>
      %31 = math.exp %30 : vector<32x128xf32>
      %cst_10 = arith.constant 1.000000e+00 : f32
      %32 = vector.broadcast %cst_10 : f32 to vector<32x128xf32>
      %33 = arith.addf %32, %31 : vector<32x128xf32>
      %34 = tpu.reciprocal %33 : vector<32x128xf32> -> vector<32x128xf32>
      %cst_11 = arith.constant 0.000000e+00 : f32
      %35 = vector.broadcast %cst_11 : f32 to vector<32x128xf32>
      %36 = arith.cmpf oge, %27, %35 : vector<32x128xf32>
      %37 = arith.mulf %31, %34 : vector<32x128xf32>
      %38 = arith.select %36, %34, %37 : vector<32x128xi1>, vector<32x128xf32>
      %39 = arith.addi %5, %21 : i32
      %40 = vector.broadcast %39 : i32 to vector<32x128xi32>
      %41 = arith.addi %40, %11 : vector<32x128xi32>
      %c6_i32_12 = arith.constant 6 : i32
      %42 = vector.broadcast %c6_i32_12 : i32 to vector<32x128xi32>
      %43 = arith.cmpi slt, %41, %42 : vector<32x128xi32>
      %cst_13 = arith.constant 0.000000e+00 : f32
      %44 = vector.broadcast %cst_13 : f32 to vector<32x128xf32>
      %45 = arith.select %43, %38, %44 : vector<32x128xi1>, vector<32x128xf32>
      %46 = arith.index_cast %21 : i32 to index
      %c0_14 = arith.constant 0 : index
      %47 = vector.load %arg3[%46, %c0_14] : memref<32x128xi8, #tpu.memory_space<vmem>>, vector<32x128xi8>
      %48 = arith.sitofp %47 : vector<32x128xi8> to vector<32x128xf32>
      %49 = vector.extract_strided_slice %45 {offsets = [0, 0], sizes = [8, 128], strides = [1, 1]} : vector<32x128xf32> to vector<8x128xf32>
      %50 = vector.extract_strided_slice %45 {offsets = [8, 0], sizes = [8, 128], strides = [1, 1]} : vector<32x128xf32> to vector<8x128xf32>
      %51 = vector.extract_strided_slice %45 {offsets = [16, 0], sizes = [8, 128], strides = [1, 1]} : vector<32x128xf32> to vector<8x128xf32>
      %52 = vector.extract_strided_slice %45 {offsets = [24, 0], sizes = [8, 128], strides = [1, 1]} : vector<32x128xf32> to vector<8x128xf32>
      %53 = arith.addf %49, %50 : vector<8x128xf32>
      %54 = arith.addf %51, %52 : vector<8x128xf32>
      %55 = arith.addf %53, %54 : vector<8x128xf32>
      %56 = arith.mulf %48, %45 : vector<32x128xf32>
      %57 = vector.extract_strided_slice %56 {offsets = [0, 0], sizes = [8, 128], strides = [1, 1]} : vector<32x128xf32> to vector<8x128xf32>
      %58 = vector.extract_strided_slice %56 {offsets = [8, 0], sizes = [8, 128], strides = [1, 1]} : vector<32x128xf32> to vector<8x128xf32>
      %59 = vector.extract_strided_slice %56 {offsets = [16, 0], sizes = [8, 128], strides = [1, 1]} : vector<32x128xf32> to vector<8x128xf32>
      %60 = vector.extract_strided_slice %56 {offsets = [24, 0], sizes = [8, 128], strides = [1, 1]} : vector<32x128xf32> to vector<8x128xf32>
      %61 = arith.addf %57, %58 : vector<8x128xf32>
      %62 = arith.addf %59, %60 : vector<8x128xf32>
      %63 = arith.addf %61, %62 : vector<8x128xf32>
      %64 = arith.addf %19, %55 : vector<8x128xf32>
      %65 = arith.addf %19, %63 : vector<8x128xf32>
      %c1_i32_15 = arith.constant 1 : i32
      %c0_16 = arith.constant 0 : index
      %c0_17 = arith.constant 0 : index
      %c0_18 = arith.constant 0 : index
      %66 = vector.load %arg4[%c0_16, %c0_17, %c0_18] : memref<1x16x128xf32, #tpu.memory_space<vmem>>, vector<1x8x128xf32>
      %67 = vector.shape_cast %66 : vector<1x8x128xf32> to vector<8x128xf32>
      %68 = arith.addf %67, %64 : vector<8x128xf32>
      %c0_19 = arith.constant 0 : index
      %c0_20 = arith.constant 0 : index
      %c0_21 = arith.constant 0 : index
      %69 = vector.load %arg4[%c0_19, %c0_20, %c0_21] : memref<1x16x128xf32, #tpu.memory_space<vmem>>, vector<1x8x128xf32>
      %70 = vector.shape_cast %69 : vector<1x8x128xf32> to vector<8x128xf32>
      %71 = vector.shape_cast %68 : vector<8x128xf32> to vector<1x8x128xf32>
      tpu.vector_store %arg4[%c0_19, %c0_20, %c0_21], %71 {strides = array<i32>} : memref<1x16x128xf32, #tpu.memory_space<vmem>>, vector<1x8x128xf32>,
      %c0_22 = arith.constant 0 : index
      %c8 = arith.constant 8 : index
      %c0_23 = arith.constant 0 : index
      %72 = vector.load %arg4[%c0_22, %c8, %c0_23] : memref<1x16x128xf32, #tpu.memory_space<vmem>>, vector<1x8x128xf32>
      %73 = vector.shape_cast %72 : vector<1x8x128xf32> to vector<8x128xf32>
      %74 = arith.addf %73, %65 : vector<8x128xf32>
      %c0_24 = arith.constant 0 : index
      %c8_25 = arith.constant 8 : index
      %c0_26 = arith.constant 0 : index
      %75 = vector.load %arg4[%c0_24, %c8_25, %c0_26] : memref<1x16x128xf32, #tpu.memory_space<vmem>>, vector<1x8x128xf32>
      %76 = vector.shape_cast %75 : vector<1x8x128xf32> to vector<8x128xf32>
      %77 = vector.shape_cast %74 : vector<8x128xf32> to vector<1x8x128xf32>
      tpu.vector_store %arg4[%c0_24, %c8_25, %c0_26], %77 {strides = array<i32>} : memref<1x16x128xf32, #tpu.memory_space<vmem>>, vector<1x8x128xf32>,
    } else {
    }
    return
  }
  func.func @transform_0(%arg0: i32, %arg1: i32) -> (i32, i32) {
    %c1_i32 = arith.constant 1 : i32
    %0 = arith.muli %arg0, %c1_i32 : i32
    %1 = arith.addi %0, %arg1 : i32
    %c0_i32 = arith.constant 0 : i32
    %2 = arith.minsi %1, %c0_i32 : i32
    %c0_i32_0 = arith.constant 0 : i32
    %c0_i32_1 = arith.constant 0 : i32
    return %2, %c0_i32_0 : i32, i32
  }
  func.func @transform_1(%arg0: i32, %arg1: i32) -> (i32, i32) {
    %c1_i32 = arith.constant 1 : i32
    %0 = arith.muli %arg0, %c1_i32 : i32
    %1 = arith.addi %0, %arg1 : i32
    %c0_i32 = arith.constant 0 : i32
    %2 = arith.minsi %1, %c0_i32 : i32
    %c0_i32_0 = arith.constant 0 : i32
    %c0_i32_1 = arith.constant 0 : i32
    return %2, %c0_i32_0 : i32, i32
  }
  func.func @transform_2(%arg0: i32, %arg1: i32) -> (i32, i32, i32) {
    %c0_i32 = arith.constant 0 : i32
    %c0_i32_0 = arith.constant 0 : i32
    %c0_i32_1 = arith.constant 0 : i32
    return %arg0, %c0_i32, %c0_i32_0 : i32, i32, i32
  }
}

</mosaic_0001>

<bundles_post_ra>
// kernel: tpu_custom_call.1
= control target key start
LH: loop header
LB: loop body
LE: loop exit
PB: predicated region body
PF: predicated region fallthrough
CT: control target
= control target key end

     0   :  { %7 = vsyncpa [#allocation3], 0  ;;  %s459_s0 = inlined_call_operand.hbm [shape: f32[6,128], index: 0, kind: input, shape index: {}]   ;;  %s460_s1 = inlined_call_operand.vmem [shape: s8[6,128], index: 1, kind: input, shape index: {}]   ;;  %s461_s2 = inlined_call_operand.hbm [shape: f32[1,16,128], index: 2, kind: output, shape index: {}]  }
   0x1   :  { %8 = vsyncpa [#allocation4], 0 }
   0x2   :  { %19 = vsyncadd [#allocation3], 384  ;;  %s405_s9 = smov [#allocation2]   ;;  %s357_s13 = scalar_lea.hbm %s459_s0, 128 }
   0x3   :  { %s24_s10 = sshll.u32 %s405_s9, 4  ;;  %p358_p0 = scmp.ne.s32.totalorder %s459_s0, %s357_s13  ;;  %s25_s10 = int_to_ptr.vmem [resolvable:$true] %s24_s10 }
   0x4   :  { %p361_p1 = scmp.lt.u32.totalorder %s357_s13, %s459_s0 }
   0x6   :  { %p363_p2 = pnand %p361_p1, %p358_p0 }
   0x8   :  { %366 = shalt.err (!%p363_p2)
}
   0x9   :  { %s367_s18 = scalar_lea.vmem %s25_s10, 128  ;;  %s371_s19 = scalar_lea.vmem %s25_s10, 512 }
   0xa   :  { %p368_p3 = scmp.ne.s32.totalorder %s25_s10, %s367_s18  ;;  %p372_p4 = scmp.lt.s32.totalorder %s25_s10, %s25_s10 }
   0xb   :  { %p373_p5 = scmp.lt.s32.totalorder %s371_s19, %s367_s18 }
   0xd   :  { %p374_p6 = por %p373_p5, %p372_p4 }
   0xf   :  { %p375_p7 = pnand %p374_p6, %p368_p3 }
  0x11   :  { %378 = shalt.err (!%p375_p7)
}
  0x12   :  { %s406_s20 = smov 128   ;;  %s407_s21 = smov 8  }
  0x13   :  { %30 = dma.hbm_to_vmem [thread:$0]  %s459_s0, 128, %s25_s10, [#allocation3], %s406_s20, %s406_s20, %s407_s21  }
  0x14   :  { %401 = dma.done.wait [#allocation3], 512  }
  0x15   :  { %402 = vsyncadd [#allocation3], 4294966784  ;;  %v204_v0 = vld [vmem:[#allocation2] sm:$0xff]  ;;  %s408_s24 = smov 127   ;;  %s409_s25 = smov 1   ;;  %v92_v1 = vlaneseq }
  0x16   :  { %208 = vrot.lane.b32.xlu0 %v204_v0, %s408_s24  ;;  %v338_v13 = vld [vmem:[%s460_s1] sm:$0xff]   ;;  %s410_s1 = smov [#allocation5]  }
  0x17   :  { %v93_v2 = vand.u32 127, %v92_v1  ;;  %v343_v14 = vunpack.c.2.s8 %v338_v13  ;;  %v344_v15 = vunpack.c.3.s8 %v338_v13  ;;  %v340_v16 = vunpack.c.1.s8 %v338_v13  ;;  %s317_s27 = sshll.u32 %s410_s1, 4  ;;  %s318_s27 = int_to_ptr.vmem [resolvable:$true] %s317_s27 }
  0x18   :  { %v97_v17 = vshrl.u32 %v92_v1, 7  ;;  %v339_v18 = vunpack.c.0.s8 %v338_v13  ;;  %s379_s28 = scalar_lea.vmem %s318_s27, 256  ;;  %p384_p9 = scmp.lt.s32.totalorder %s318_s27, %s318_s27 }
  0x19   :  { %v94_v3 = vand.u32 1, %v93_v2  ;;  %v292_v19 = vcvt.s32.f32 %v343_v14  ;;  %v293_v20 = vcvt.s32.f32 %v344_v15  ;;  %v291_v21 = vcvt.s32.f32 %v340_v16  ;;  %p380_p8 = scmp.ne.s32.totalorder %s318_s27, %s379_s28  ;;  %p385_p10 = scmp.lt.s32.totalorder %s379_s28, %s379_s28 }
  0x1a   :  { %216 = vrot.lane.b32.xlu0 %v204_v0, %s409_s25  ;;  %vm274_vm1 = vcmp.lt.s32.totalorder %v97_v17, 6  ;;  %v290_v23 = vcvt.s32.f32 %v339_v18 }
  0x1b   :  { %vm95_vm0 = vcmp.eq.s32.totalorder %v94_v3, 0  ;;  %v299_v25 = vmul.f32 0.0, %v292_v19  ;;  %v300_v26 = vmul.f32 0.0, %v293_v20  ;;  %v298_v27 = vmul.f32 0.0, %v291_v21  ;;  %p386_p11 = por %p385_p10, %p384_p9 }
  0x1d   :  { %v302_v31 = vadd.f32 %v300_v26, %v299_v25  ;;  %p387_p12 = pnand %p386_p11, %p380_p8 }
  0x88   :  { %v209_v4 = vpop.permute.xlu0 %208 }
  0x8c   :  { %v217_v5 = vpop.permute.xlu0 %216 }
  0x8d   :  { %v224_v6 = vsel %vm95_vm0, %v209_v4, %v217_v5 }
  0x8e   :  { %v228_v7 = vsub.f32 %v204_v0, %v224_v6 }
  0x90   :  { %v232_v8 = vand.u32 2147483647, %v228_v7  ;;  %vm256_vm2 = vcmp.ge.f32.partialorder %v228_v7, 0.0 }
  0x92   :  { %v236_v9 = vsub.f32 0.0, %v232_v8 }
  0x94   :  { %v240_v10 = vmul.f32 1.442695, %v236_v9 }
  0x96   :  { %353 = vpow2.f32 %v240_v10 }
  0xa0   :  { %v354_v11 = vpop.eup %353 }
  0xa1   :  { %v248_v12 = vadd.f32 1.0, %v354_v11 }
  0xa3   :  { %355 = vrcp.f32 %v248_v12 }
  0xad   :  { %v356_v22 = vpop.eup %355 }
  0xae   :  { %v260_v24 = vmul.f32 %v356_v22, %v354_v11 }
  0xb0   :  { %v264_v28 = vsel %vm256_vm2, %v356_v22, %v260_v24 }
  0xb1   :  { %v278_v29 = vsel %vm274_vm1, %v264_v28, 0.0 }
  0xb2   :  { %v297_v30 = vmul.f32 %v290_v23, %v278_v29  ;;  %308 = vst [vmem:[#allocation5] sm:$0xff] %v278_v29 }
  0xb4   :  { %v301_v32 = vadd.f32 %v298_v27, %v297_v30 }
  0xb6   :  { %v303_v33 = vadd.f32 %v302_v31, %v301_v32 }
  0xb8   :  { %311 = vst [vmem:[#allocation5 + $0x8] sm:$0xff] %v303_v33 }
  0xb9   :  { %390 = shalt.err (!%p387_p12)
}
  0xba   :  { %s391_s3 = scalar_lea.hbm %s461_s2, 256 }
  0xbb   :  { %p392_p13 = scmp.ne.s32.totalorder %s461_s2, %s391_s3  ;;  %p395_p0 = scmp.lt.u32.totalorder %s391_s3, %s461_s2 }
  0xbd   :  { %p397_p1 = pnand %p395_p0, %p392_p13 }
  0xbf   :  { %400 = shalt.err (!%p397_p1)
}
  0xc0   :  { %323 = dma.vmem_to_hbm [thread:$0]  %s318_s27, 256, %s461_s2, [#allocation4], %s406_s20, %s406_s20, %s407_s21  }
  0xc1   :  { %403 = dma.done.wait [#allocation4], 256  }
  0xc2   :  { %404 = vsyncadd [#allocation4], 4294967040 }
  0xc3   :  { %327 = vsyncpa [#allocation3], 1 }
  0xc4   :  { %328 = vsyncpa [#allocation4], 1 }

</bundles_post_ra>
